<compile_context>
chip_gen: v7x
topology: tpu7x:2x2x1
jax: 0.10.0
libtpu: 0.0.40
codegen_flags: <defaults>
</compile_context>

<pallas_src>
import math
import numpy as np
import jax
import jax.numpy as jnp
from jax.experimental import pallas as pl
from jax.experimental.pallas import tpu as pltpu


# ------------------------------- the kernel --------------------------------
def _make_kernel(compute_dtype):
    cdt = compute_dtype

    def taps(x):
        # x: (L, C) rows of ONE sample.  Returns the Conv1d(k=3, padding=1)
        # taps [x_{t-1}, x_t, x_{t+1}] with zero padding at t=0 / t=L-1.
        # Edge masks come from an in-kernel iota (no HBM inputs needed).
        L = x.shape[0]
        ridx = jax.lax.broadcasted_iota(jnp.int32, (L, 1), 0)
        not_first = (ridx > 0).astype(x.dtype)
        not_last = (ridx < L - 1).astype(x.dtype)
        prev = pltpu.roll(x, 1, axis=0) * not_first     # XLU sublane rotate + VPU mask
        nxt = pltpu.roll(x, L - 1, axis=0) * not_last   # roll(-1) expressed positively
        return prev, x, nxt

    def conv3(x, w_ref):
        # Conv1d(k=3, pad=1) as three accumulating dots against the (C, H)
        # per-tap slices of w_ref (3, C, H); f32 accumulation, no concat temps.
        prev, cur, nxt = taps(x)
        acc = jnp.dot(prev.astype(cdt), w_ref[0], preferred_element_type=jnp.float32)
        acc = acc + jnp.dot(cur.astype(cdt), w_ref[1], preferred_element_type=jnp.float32)
        acc = acc + jnp.dot(nxt.astype(cdt), w_ref[2], preferred_element_type=jnp.float32)
        return acc

    def kernel(s1_ref, s2_ref, wa_ref, ba_ref, pt_ref, bp_ref,
               wb_ref, bb_ref, wfa_ref, wfb_ref, bf_ref,
               wh_ref, bh_ref, out_ref):
        s1 = s1_ref[0]                                   # (L1, C1) f32
        s2 = s2_ref[0]                                   # (L2, C2) f32

        # SAR encoder: Conv1d(k=3, pad=1) -> ReLU
        hA = jax.nn.relu(conv3(s1, wa_ref) + ba_ref[...])                # (L1, H)

        # learned temporal resample L1 -> L2 (per-sample; no kron / no B^2)
        hA = jax.nn.relu(
            jnp.dot(pt_ref[...], hA.astype(cdt),
                    preferred_element_type=jnp.float32) + bp_ref[...])   # (L2, H)

        # optical-index / mask encoder
        hB = jax.nn.relu(conv3(s2, wb_ref) + bb_ref[...])                # (L2, H)

        # fusion conv over channel-concat [hA, hB] == sum of per-branch convs
        h = jax.nn.relu(conv3(hA, wfa_ref) + conv3(hB, wfb_ref)
                        + bf_ref[...])                                   # (L2, H)

        # both 1-channel heads, computed lane-dense as (2, L2):
        #   heads = sum_t  wh[t] (2,H)  @  h_tap_t (L2,H)^T     (+ bias (2,1))
        hp, hc, hn = taps(h)
        dn = (((1,), (1,)), ((), ()))
        heads = jax.lax.dot_general(wh_ref[0], hp.astype(cdt), dn,
                                    preferred_element_type=jnp.float32)
        heads = heads + jax.lax.dot_general(wh_ref[1], hc.astype(cdt), dn,
                                            preferred_element_type=jnp.float32)
        heads = heads + jax.lax.dot_general(wh_ref[2], hn.astype(cdt), dn,
                                            preferred_element_type=jnp.float32)
        heads = heads + bh_ref[...]                                      # (2, L2)

        ori = heads[0:1, :]                        # fake_B_ori
        fake = ori + jnp.tanh(heads[1:2, :])       # residual-refined fake_B
        # TODO(synk): the exact fake_B / fake_B_ori relationship lives inside
        # the missing `Model` class; residual-refined head used here.

        # single lane-dense store: row 0 = fake_B, row 1 = fake_B_ori
        out_ref[0] = jnp.concatenate([fake, ori], axis=0).astype(out_ref.dtype)

    return kernel


# ------------------------------- parameters --------------------------------
def init_params(key, s1_len, s2_len, s1_channels, s2_channels, hidden):
    def xavier(k, shape):
        fan_in, fan_out = shape[-2], shape[-1]
        lim = math.sqrt(6.0 / (fan_in + fan_out))
        return jax.random.uniform(k, shape, jnp.float32, -lim, lim)

    ks = jax.random.split(key, 8)
    H = hidden
    return dict(
        wa=xavier(ks[0], (3, s1_channels, H)), ba=jnp.zeros((1, H), jnp.float32),
        pt=xavier(ks[1], (s2_len, s1_len)),    bp=jnp.zeros((1, H), jnp.float32),
        wb=xavier(ks[2], (3, s2_channels, H)), bb=jnp.zeros((1, H), jnp.float32),
        wfa=xavier(ks[3], (3, H, H)),
        wfb=xavier(ks[4], (3, H, H)),          bf=jnp.zeros((1, H), jnp.float32),
        who=xavier(ks[5], (3, 1, H)),          bho=jnp.zeros((1, 1), jnp.float32),
        whr=xavier(ks[6], (3, 1, H)),          bhr=jnp.zeros((1, 1), jnp.float32),
    )


def prepare_netg_weights(params, compute_dtype=jnp.float32):
    """One-time weight prep (dtype cast + head packing) hoisted out of forward.

    compute_dtype = jnp.float32 (bit-exact default) or jnp.bfloat16 for MXU
    operands on ANY TPU generation (v5e/v6e/v7x are all natively bf16 on the
    MXU); accumulation stays f32 via preferred_element_type.
    """
    cdt = compute_dtype
    wh = jnp.concatenate([params["who"], params["whr"]], axis=1).astype(cdt)  # (3,2,H)
    bh = jnp.concatenate([params["bho"], params["bhr"]], axis=0)              # (2,1)
    return dict(
        wa=params["wa"].astype(cdt), ba=params["ba"],
        pt=params["pt"].astype(cdt), bp=params["bp"],
        wb=params["wb"].astype(cdt), bb=params["bb"],
        wfa=params["wfa"].astype(cdt), wfb=params["wfb"].astype(cdt),
        bf=params["bf"], wh=wh, bh=bh, compute_dtype=cdt,
    )


# ------------------------------- wrapper ------------------------------------
def tsfgan_forward(weights, real_s1, ind_syn, mask_s2):
    """Mirrors TSFGAN.forward(): netG(real_s1, concat([ind_syn, mask_s2[:,None]], 1)).

    real_s1 : (B, C1, L1)   float32  (PyTorch NCL)
    ind_syn : (B, C2-1, L2) float32
    mask_s2 : (B, L2)       float32
    weights : output of prepare_netg_weights()
    returns fake_B, fake_B_ori, each (B, 1, L2)
    """
    B, C1, L1 = real_s1.shape
    L2 = mask_s2.shape[1]
    s2_cat = jnp.concatenate([ind_syn, mask_s2[:, None, :]], axis=1)      # (B,C2,L2)
    C2 = s2_cat.shape[1]
    H = weights["ba"].shape[1]
    cdt = weights["compute_dtype"]

    # channels-last per-sample layout (time on sublanes, channels on lanes)
    s1 = jnp.transpose(real_s1, (0, 2, 1)).astype(jnp.float32)            # (B,L1,C1)
    s2 = jnp.transpose(s2_cat, (0, 2, 1)).astype(jnp.float32)             # (B,L2,C2)

    def rep(arr):
        shape = arr.shape
        return pl.BlockSpec(shape, lambda b, z=(0,) * len(shape): z)

    weight_keys = ("wa", "ba", "pt", "bp", "wb", "bb",
                   "wfa", "wfb", "bf", "wh", "bh")
    weight_bytes = sum(int(np.prod(weights[k].shape))
                       * np.dtype(weights[k].dtype).itemsize for k in weight_keys)
    flops = 2 * B * (L1 * 3 * C1 * H + L2 * L1 * H + L2 * 3 * C2 * H
                     + L2 * 6 * H * H + L2 * 3 * H * 2)
    cost = pl.CostEstimate(
        flops=int(flops),
        transcendentals=int(B * L2),
        bytes_accessed=int(4 * (s1.size + s2.size + B * 2 * L2) + weight_bytes))

    # Grid over batch: per-block VMEM footprint is tiny (fits every chip's
    # scoped VMEM), blocks pipeline HBM<->VMEM, and the batch axis shards
    # across both TensorCores on v7x.
    out = pl.pallas_call(
        _make_kernel(cdt),
        out_shape=jax.ShapeDtypeStruct((B, 2, L2), jnp.float32),
        grid=(B,),
        in_specs=[
            pl.BlockSpec((1, L1, C1), lambda b: (b, 0, 0)),
            pl.BlockSpec((1, L2, C2), lambda b: (b, 0, 0)),
            rep(weights["wa"]), rep(weights["ba"]),
            rep(weights["pt"]), rep(weights["bp"]),
            rep(weights["wb"]), rep(weights["bb"]),
            rep(weights["wfa"]), rep(weights["wfb"]), rep(weights["bf"]),
            rep(weights["wh"]), rep(weights["bh"]),
        ],
        out_specs=pl.BlockSpec((1, 2, L2), lambda b: (b, 0, 0)),
        compiler_params=pltpu.CompilerParams(dimension_semantics=("parallel",)),
        cost_estimate=cost,
    )(s1, s2,
      weights["wa"], weights["ba"], weights["pt"], weights["bp"],
      weights["wb"], weights["bb"], weights["wfa"], weights["wfb"],
      weights["bf"], weights["wh"], weights["bh"])

    # Output already lane-dense in PyTorch NCL shape: just slice the 2 rows.
    fake_B = out[:, 0:1, :]        # (B, 1, L2)
    fake_B_ori = out[:, 1:2, :]    # (B, 1, L2)
    return fake_B, fake_B_ori


if __name__ == "__main__":
    # Small shapes consistent with the module: s1 = SAR time series (NCL),
    # ind_syn + mask_s2 form the s2 branch (optical_channels + 1 channels).
    B = 2
    s1_len, s2_len = 24, 16
    sar_channels = 4          # len(s1_name)
    optical_channels = 3      # len(s2_name)  -> s2_channels = optical_channels + 1
    hidden = 32

    key = jax.random.PRNGKey(0)
    k_par, k_s1, k_ind, k_mask = jax.random.split(key, 4)

    params = init_params(k_par, s1_len, s2_len,
                         sar_channels, optical_channels + 1, hidden)
    weights = prepare_netg_weights(params, compute_dtype=jnp.float32)

    real_s1 = jax.random.normal(k_s1, (B, sar_channels, s1_len), jnp.float32)
    ind_syn = jax.random.normal(k_ind, (B, optical_channels, s2_len), jnp.float32)
    mask_s2 = (jax.random.uniform(k_mask, (B, s2_len)) > 0.5).astype(jnp.float32)

    fake_B, fake_B_ori = tsfgan_forward(weights, real_s1, ind_syn, mask_s2)
    jax.block_until_ready((fake_B, fake_B_ori))

    assert fake_B.shape == (B, 1, s2_len)
    assert fake_B_ori.shape == (B, 1, s2_len)
    assert bool(jnp.all(jnp.isfinite(fake_B))) and bool(jnp.all(jnp.isfinite(fake_B_ori)))
    print("KERNEL_OK")
</pallas_src>

<mosaic_0001>
module attributes {stable_mosaic.version = 11 : i64} {
  func.func @kernel(%arg0: i32, %arg1: memref<1x24x4xf32, #tpu.memory_space<vmem>>, %arg2: memref<1x16x4xf32, #tpu.memory_space<vmem>>, %arg3: memref<3x4x32xf32, #tpu.memory_space<vmem>>, %arg4: memref<1x32xf32, #tpu.memory_space<vmem>>, %arg5: memref<16x24xf32, #tpu.memory_space<vmem>>, %arg6: memref<1x32xf32, #tpu.memory_space<vmem>>, %arg7: memref<3x4x32xf32, #tpu.memory_space<vmem>>, %arg8: memref<1x32xf32, #tpu.memory_space<vmem>>, %arg9: memref<3x32x32xf32, #tpu.memory_space<vmem>>, %arg10: memref<3x32x32xf32, #tpu.memory_space<vmem>>, %arg11: memref<1x32xf32, #tpu.memory_space<vmem>>, %arg12: memref<3x2x32xf32, #tpu.memory_space<vmem>>, %arg13: memref<2x1xf32, #tpu.memory_space<vmem>>, %arg14: memref<1x2x16xf32, #tpu.memory_space<vmem>>) attributes {dimension_semantics = [#tpu.dimension_semantics<parallel>], iteration_bounds = array<i64: 2>, scalar_prefetch = 0 : i64, scratch_operands = 0 : i64, tpu.core_type = #tpu.core_type<tc>, window_params = [{transform_indices = @transform_0, window_bounds = array<i64: 1, 24, 4>}, {transform_indices = @transform_1, window_bounds = array<i64: 1, 16, 4>}, {pipeline_mode = #tpu.pipeline_mode<synchronous>, transform_indices = @transform_2, window_bounds = array<i64: 3, 4, 32>}, {pipeline_mode = #tpu.pipeline_mode<synchronous>, transform_indices = @transform_3, window_bounds = array<i64: 1, 32>}, {pipeline_mode = #tpu.pipeline_mode<synchronous>, transform_indices = @transform_4, window_bounds = array<i64: 16, 24>}, {pipeline_mode = #tpu.pipeline_mode<synchronous>, transform_indices = @transform_5, window_bounds = array<i64: 1, 32>}, {pipeline_mode = #tpu.pipeline_mode<synchronous>, transform_indices = @transform_6, window_bounds = array<i64: 3, 4, 32>}, {pipeline_mode = #tpu.pipeline_mode<synchronous>, transform_indices = @transform_7, window_bounds = array<i64: 1, 32>}, {pipeline_mode = #tpu.pipeline_mode<synchronous>, transform_indices = @transform_8, window_bounds = array<i64: 3, 32, 32>}, {pipeline_mode = #tpu.pipeline_mode<synchronous>, transform_indices = @transform_9, window_bounds = array<i64: 3, 32, 32>}, {pipeline_mode = #tpu.pipeline_mode<synchronous>, transform_indices = @transform_10, window_bounds = array<i64: 1, 32>}, {pipeline_mode = #tpu.pipeline_mode<synchronous>, transform_indices = @transform_11, window_bounds = array<i64: 3, 2, 32>}, {pipeline_mode = #tpu.pipeline_mode<synchronous>, transform_indices = @transform_12, window_bounds = array<i64: 2, 1>}, {transform_indices = @transform_13, window_bounds = array<i64: 1, 2, 16>}]} {
    %c0 = arith.constant 0 : index
    %c0_0 = arith.constant 0 : index
    %c0_1 = arith.constant 0 : index
    %0 = vector.load %arg1[%c0, %c0_0, %c0_1] : memref<1x24x4xf32, #tpu.memory_space<vmem>>, vector<1x24x4xf32>
    %1 = vector.shape_cast %0 : vector<1x24x4xf32> to vector<24x4xf32>
    %c0_2 = arith.constant 0 : index
    %c0_3 = arith.constant 0 : index
    %c0_4 = arith.constant 0 : index
    %2 = vector.load %arg2[%c0_2, %c0_3, %c0_4] : memref<1x16x4xf32, #tpu.memory_space<vmem>>, vector<1x16x4xf32>
    %3 = vector.shape_cast %2 : vector<1x16x4xf32> to vector<16x4xf32>
    %4 = tpu.iota {dimensions = array<i32: 0>} : vector<24x1xi32>
    %c0_i32 = arith.constant 0 : i32
    %5 = vector.broadcast %c0_i32 : i32 to vector<24x1xi32>
    %6 = arith.cmpi sgt, %4, %5 : vector<24x1xi32>
    %7 = arith.extui %6 : vector<24x1xi1> to vector<24x1xi32>
    %8 = arith.sitofp %7 : vector<24x1xi32> to vector<24x1xf32>
    %c23_i32 = arith.constant 23 : i32
    %9 = vector.broadcast %c23_i32 : i32 to vector<24x1xi32>
    %10 = arith.cmpi slt, %4, %9 : vector<24x1xi32>
    %11 = arith.extui %10 : vector<24x1xi1> to vector<24x1xi32>
    %12 = arith.sitofp %11 : vector<24x1xi32> to vector<24x1xf32>
    %c1_i32 = arith.constant 1 : i32
    %13 = tpu.dynamic_rotate %1 by %c1_i32 dim 0 : vector<24x4xf32>, i32 -> vector<24x4xf32>
    %14 = vector.broadcast %8 : vector<24x1xf32> to vector<24x4xf32>
    %15 = arith.mulf %13, %14 : vector<24x4xf32>
    %c23_i32_5 = arith.constant 23 : i32
    %16 = tpu.dynamic_rotate %1 by %c23_i32_5 dim 0 : vector<24x4xf32>, i32 -> vector<24x4xf32>
    %17 = vector.broadcast %12 : vector<24x1xf32> to vector<24x4xf32>
    %18 = arith.mulf %16, %17 : vector<24x4xf32>
    %c0_6 = arith.constant 0 : index
    %c0_7 = arith.constant 0 : index
    %c0_8 = arith.constant 0 : index
    %19 = vector.load %arg3[%c0_6, %c0_7, %c0_8] : memref<3x4x32xf32, #tpu.memory_space<vmem>>, vector<1x4x32xf32>
    %20 = vector.shape_cast %19 : vector<1x4x32xf32> to vector<4x32xf32>
    %cst = arith.constant dense<0.000000e+00> : vector<24x32xf32>
    %21 = tpu.matmul %15, %20, %cst {dimension_numbers = #tpu.dot_dimension_numbers<[1], [0], [0], [1], [0, 0, 1, 1], [], []>} : vector<24x4xf32>, vector<4x32xf32>, vector<24x32xf32> -> vector<24x32xf32>
    %c1 = arith.constant 1 : index
    %c0_9 = arith.constant 0 : index
    %c0_10 = arith.constant 0 : index
    %22 = vector.load %arg3[%c1, %c0_9, %c0_10] : memref<3x4x32xf32, #tpu.memory_space<vmem>>, vector<1x4x32xf32>
    %23 = vector.shape_cast %22 : vector<1x4x32xf32> to vector<4x32xf32>
    %cst_11 = arith.constant dense<0.000000e+00> : vector<24x32xf32>
    %24 = tpu.matmul %1, %23, %cst_11 {dimension_numbers = #tpu.dot_dimension_numbers<[1], [0], [0], [1], [0, 0, 1, 1], [], []>} : vector<24x4xf32>, vector<4x32xf32>, vector<24x32xf32> -> vector<24x32xf32>
    %25 = arith.addf %21, %24 : vector<24x32xf32>
    %c2 = arith.constant 2 : index
    %c0_12 = arith.constant 0 : index
    %c0_13 = arith.constant 0 : index
    %26 = vector.load %arg3[%c2, %c0_12, %c0_13] : memref<3x4x32xf32, #tpu.memory_space<vmem>>, vector<1x4x32xf32>
    %27 = vector.shape_cast %26 : vector<1x4x32xf32> to vector<4x32xf32>
    %cst_14 = arith.constant dense<0.000000e+00> : vector<24x32xf32>
    %28 = tpu.matmul %18, %27, %cst_14 {dimension_numbers = #tpu.dot_dimension_numbers<[1], [0], [0], [1], [0, 0, 1, 1], [], []>} : vector<24x4xf32>, vector<4x32xf32>, vector<24x32xf32> -> vector<24x32xf32>
    %29 = arith.addf %25, %28 : vector<24x32xf32>
    %c0_15 = arith.constant 0 : index
    %c0_16 = arith.constant 0 : index
    %30 = vector.load %arg4[%c0_15, %c0_16] : memref<1x32xf32, #tpu.memory_space<vmem>>, vector<1x32xf32>
    %31 = vector.broadcast %30 : vector<1x32xf32> to vector<24x32xf32>
    %32 = arith.addf %29, %31 : vector<24x32xf32>
    %cst_17 = arith.constant 0.000000e+00 : f32
    %33 = vector.broadcast %cst_17 : f32 to vector<24x32xf32>
    %34 = arith.maximumf %32, %33 : vector<24x32xf32>
    %c0_18 = arith.constant 0 : index
    %c0_19 = arith.constant 0 : index
    %35 = vector.load %arg5[%c0_18, %c0_19] : memref<16x24xf32, #tpu.memory_space<vmem>>, vector<16x24xf32>
    %cst_20 = arith.constant dense<0.000000e+00> : vector<16x32xf32>
    %36 = tpu.matmul %35, %34, %cst_20 {dimension_numbers = #tpu.dot_dimension_numbers<[1], [0], [0], [1], [0, 0, 1, 1], [], []>} : vector<16x24xf32>, vector<24x32xf32>, vector<16x32xf32> -> vector<16x32xf32>
    %c0_21 = arith.constant 0 : index
    %c0_22 = arith.constant 0 : index
    %37 = vector.load %arg6[%c0_21, %c0_22] : memref<1x32xf32, #tpu.memory_space<vmem>>, vector<1x32xf32>
    %38 = vector.broadcast %37 : vector<1x32xf32> to vector<16x32xf32>
    %39 = arith.addf %36, %38 : vector<16x32xf32>
    %cst_23 = arith.constant 0.000000e+00 : f32
    %40 = vector.broadcast %cst_23 : f32 to vector<16x32xf32>
    %41 = arith.maximumf %39, %40 : vector<16x32xf32>
    %42 = tpu.iota {dimensions = array<i32: 0>} : vector<16x1xi32>
    %c0_i32_24 = arith.constant 0 : i32
    %43 = vector.broadcast %c0_i32_24 : i32 to vector<16x1xi32>
    %44 = arith.cmpi sgt, %42, %43 : vector<16x1xi32>
    %45 = arith.extui %44 : vector<16x1xi1> to vector<16x1xi32>
    %46 = arith.sitofp %45 : vector<16x1xi32> to vector<16x1xf32>
    %c15_i32 = arith.constant 15 : i32
    %47 = vector.broadcast %c15_i32 : i32 to vector<16x1xi32>
    %48 = arith.cmpi slt, %42, %47 : vector<16x1xi32>
    %49 = arith.extui %48 : vector<16x1xi1> to vector<16x1xi32>
    %50 = arith.sitofp %49 : vector<16x1xi32> to vector<16x1xf32>
    %c1_i32_25 = arith.constant 1 : i32
    %51 = tpu.dynamic_rotate %3 by %c1_i32_25 dim 0 : vector<16x4xf32>, i32 -> vector<16x4xf32>
    %52 = vector.broadcast %46 : vector<16x1xf32> to vector<16x4xf32>
    %53 = arith.mulf %51, %52 : vector<16x4xf32>
    %c15_i32_26 = arith.constant 15 : i32
    %54 = tpu.dynamic_rotate %3 by %c15_i32_26 dim 0 : vector<16x4xf32>, i32 -> vector<16x4xf32>
    %55 = vector.broadcast %50 : vector<16x1xf32> to vector<16x4xf32>
    %56 = arith.mulf %54, %55 : vector<16x4xf32>
    %c0_27 = arith.constant 0 : index
    %c0_28 = arith.constant 0 : index
    %c0_29 = arith.constant 0 : index
    %57 = vector.load %arg7[%c0_27, %c0_28, %c0_29] : memref<3x4x32xf32, #tpu.memory_space<vmem>>, vector<1x4x32xf32>
    %58 = vector.shape_cast %57 : vector<1x4x32xf32> to vector<4x32xf32>
    %cst_30 = arith.constant dense<0.000000e+00> : vector<16x32xf32>
    %59 = tpu.matmul %53, %58, %cst_30 {dimension_numbers = #tpu.dot_dimension_numbers<[1], [0], [0], [1], [0, 0, 1, 1], [], []>} : vector<16x4xf32>, vector<4x32xf32>, vector<16x32xf32> -> vector<16x32xf32>
    %c1_31 = arith.constant 1 : index
    %c0_32 = arith.constant 0 : index
    %c0_33 = arith.constant 0 : index
    %60 = vector.load %arg7[%c1_31, %c0_32, %c0_33] : memref<3x4x32xf32, #tpu.memory_space<vmem>>, vector<1x4x32xf32>
    %61 = vector.shape_cast %60 : vector<1x4x32xf32> to vector<4x32xf32>
    %cst_34 = arith.constant dense<0.000000e+00> : vector<16x32xf32>
    %62 = tpu.matmul %3, %61, %cst_34 {dimension_numbers = #tpu.dot_dimension_numbers<[1], [0], [0], [1], [0, 0, 1, 1], [], []>} : vector<16x4xf32>, vector<4x32xf32>, vector<16x32xf32> -> vector<16x32xf32>
    %63 = arith.addf %59, %62 : vector<16x32xf32>
    %c2_35 = arith.constant 2 : index
    %c0_36 = arith.constant 0 : index
    %c0_37 = arith.constant 0 : index
    %64 = vector.load %arg7[%c2_35, %c0_36, %c0_37] : memref<3x4x32xf32, #tpu.memory_space<vmem>>, vector<1x4x32xf32>
    %65 = vector.shape_cast %64 : vector<1x4x32xf32> to vector<4x32xf32>
    %cst_38 = arith.constant dense<0.000000e+00> : vector<16x32xf32>
    %66 = tpu.matmul %56, %65, %cst_38 {dimension_numbers = #tpu.dot_dimension_numbers<[1], [0], [0], [1], [0, 0, 1, 1], [], []>} : vector<16x4xf32>, vector<4x32xf32>, vector<16x32xf32> -> vector<16x32xf32>
    %67 = arith.addf %63, %66 : vector<16x32xf32>
    %c0_39 = arith.constant 0 : index
    %c0_40 = arith.constant 0 : index
    %68 = vector.load %arg8[%c0_39, %c0_40] : memref<1x32xf32, #tpu.memory_space<vmem>>, vector<1x32xf32>
    %69 = vector.broadcast %68 : vector<1x32xf32> to vector<16x32xf32>
    %70 = arith.addf %67, %69 : vector<16x32xf32>
    %cst_41 = arith.constant 0.000000e+00 : f32
    %71 = vector.broadcast %cst_41 : f32 to vector<16x32xf32>
    %72 = arith.maximumf %70, %71 : vector<16x32xf32>
    %73 = tpu.iota {dimensions = array<i32: 0>} : vector<16x1xi32>
    %c0_i32_42 = arith.constant 0 : i32
    %74 = vector.broadcast %c0_i32_42 : i32 to vector<16x1xi32>
    %75 = arith.cmpi sgt, %73, %74 : vector<16x1xi32>
    %76 = arith.extui %75 : vector<16x1xi1> to vector<16x1xi32>
    %77 = arith.sitofp %76 : vector<16x1xi32> to vector<16x1xf32>
    %c15_i32_43 = arith.constant 15 : i32
    %78 = vector.broadcast %c15_i32_43 : i32 to vector<16x1xi32>
    %79 = arith.cmpi slt, %73, %78 : vector<16x1xi32>
    %80 = arith.extui %79 : vector<16x1xi1> to vector<16x1xi32>
    %81 = arith.sitofp %80 : vector<16x1xi32> to vector<16x1xf32>
    %c1_i32_44 = arith.constant 1 : i32
    %82 = tpu.dynamic_rotate %41 by %c1_i32_44 dim 0 : vector<16x32xf32>, i32 -> vector<16x32xf32>
    %83 = vector.broadcast %77 : vector<16x1xf32> to vector<16x32xf32>
    %84 = arith.mulf %82, %83 : vector<16x32xf32>
    %c15_i32_45 = arith.constant 15 : i32
    %85 = tpu.dynamic_rotate %41 by %c15_i32_45 dim 0 : vector<16x32xf32>, i32 -> vector<16x32xf32>
    %86 = vector.broadcast %81 : vector<16x1xf32> to vector<16x32xf32>
    %87 = arith.mulf %85, %86 : vector<16x32xf32>
    %c0_46 = arith.constant 0 : index
    %c0_47 = arith.constant 0 : index
    %c0_48 = arith.constant 0 : index
    %88 = vector.load %arg9[%c0_46, %c0_47, %c0_48] : memref<3x32x32xf32, #tpu.memory_space<vmem>>, vector<1x32x32xf32>
    %89 = vector.shape_cast %88 : vector<1x32x32xf32> to vector<32x32xf32>
    %cst_49 = arith.constant dense<0.000000e+00> : vector<16x32xf32>
    %90 = tpu.matmul %84, %89, %cst_49 {dimension_numbers = #tpu.dot_dimension_numbers<[1], [0], [0], [1], [0, 0, 1, 1], [], []>} : vector<16x32xf32>, vector<32x32xf32>, vector<16x32xf32> -> vector<16x32xf32>
    %c1_50 = arith.constant 1 : index
    %c0_51 = arith.constant 0 : index
    %c0_52 = arith.constant 0 : index
    %91 = vector.load %arg9[%c1_50, %c0_51, %c0_52] : memref<3x32x32xf32, #tpu.memory_space<vmem>>, vector<1x32x32xf32>
    %92 = vector.shape_cast %91 : vector<1x32x32xf32> to vector<32x32xf32>
    %cst_53 = arith.constant dense<0.000000e+00> : vector<16x32xf32>
    %93 = tpu.matmul %41, %92, %cst_53 {dimension_numbers = #tpu.dot_dimension_numbers<[1], [0], [0], [1], [0, 0, 1, 1], [], []>} : vector<16x32xf32>, vector<32x32xf32>, vector<16x32xf32> -> vector<16x32xf32>
    %94 = arith.addf %90, %93 : vector<16x32xf32>
    %c2_54 = arith.constant 2 : index
    %c0_55 = arith.constant 0 : index
    %c0_56 = arith.constant 0 : index
    %95 = vector.load %arg9[%c2_54, %c0_55, %c0_56] : memref<3x32x32xf32, #tpu.memory_space<vmem>>, vector<1x32x32xf32>
    %96 = vector.shape_cast %95 : vector<1x32x32xf32> to vector<32x32xf32>
    %cst_57 = arith.constant dense<0.000000e+00> : vector<16x32xf32>
    %97 = tpu.matmul %87, %96, %cst_57 {dimension_numbers = #tpu.dot_dimension_numbers<[1], [0], [0], [1], [0, 0, 1, 1], [], []>} : vector<16x32xf32>, vector<32x32xf32>, vector<16x32xf32> -> vector<16x32xf32>
    %98 = arith.addf %94, %97 : vector<16x32xf32>
    %99 = tpu.iota {dimensions = array<i32: 0>} : vector<16x1xi32>
    %c0_i32_58 = arith.constant 0 : i32
    %100 = vector.broadcast %c0_i32_58 : i32 to vector<16x1xi32>
    %101 = arith.cmpi sgt, %99, %100 : vector<16x1xi32>
    %102 = arith.extui %101 : vector<16x1xi1> to vector<16x1xi32>
    %103 = arith.sitofp %102 : vector<16x1xi32> to vector<16x1xf32>
    %c15_i32_59 = arith.constant 15 : i32
    %104 = vector.broadcast %c15_i32_59 : i32 to vector<16x1xi32>
    %105 = arith.cmpi slt, %99, %104 : vector<16x1xi32>
    %106 = arith.extui %105 : vector<16x1xi1> to vector<16x1xi32>
    %107 = arith.sitofp %106 : vector<16x1xi32> to vector<16x1xf32>
    %c1_i32_60 = arith.constant 1 : i32
    %108 = tpu.dynamic_rotate %72 by %c1_i32_60 dim 0 : vector<16x32xf32>, i32 -> vector<16x32xf32>
    %109 = vector.broadcast %103 : vector<16x1xf32> to vector<16x32xf32>
    %110 = arith.mulf %108, %109 : vector<16x32xf32>
    %c15_i32_61 = arith.constant 15 : i32
    %111 = tpu.dynamic_rotate %72 by %c15_i32_61 dim 0 : vector<16x32xf32>, i32 -> vector<16x32xf32>
    %112 = vector.broadcast %107 : vector<16x1xf32> to vector<16x32xf32>
    %113 = arith.mulf %111, %112 : vector<16x32xf32>
    %c0_62 = arith.constant 0 : index
    %c0_63 = arith.constant 0 : index
    %c0_64 = arith.constant 0 : index
    %114 = vector.load %arg10[%c0_62, %c0_63, %c0_64] : memref<3x32x32xf32, #tpu.memory_space<vmem>>, vector<1x32x32xf32>
    %115 = vector.shape_cast %114 : vector<1x32x32xf32> to vector<32x32xf32>
    %cst_65 = arith.constant dense<0.000000e+00> : vector<16x32xf32>
    %116 = tpu.matmul %110, %115, %cst_65 {dimension_numbers = #tpu.dot_dimension_numbers<[1], [0], [0], [1], [0, 0, 1, 1], [], []>} : vector<16x32xf32>, vector<32x32xf32>, vector<16x32xf32> -> vector<16x32xf32>
    %c1_66 = arith.constant 1 : index
    %c0_67 = arith.constant 0 : index
    %c0_68 = arith.constant 0 : index
    %117 = vector.load %arg10[%c1_66, %c0_67, %c0_68] : memref<3x32x32xf32, #tpu.memory_space<vmem>>, vector<1x32x32xf32>
    %118 = vector.shape_cast %117 : vector<1x32x32xf32> to vector<32x32xf32>
    %cst_69 = arith.constant dense<0.000000e+00> : vector<16x32xf32>
    %119 = tpu.matmul %72, %118, %cst_69 {dimension_numbers = #tpu.dot_dimension_numbers<[1], [0], [0], [1], [0, 0, 1, 1], [], []>} : vector<16x32xf32>, vector<32x32xf32>, vector<16x32xf32> -> vector<16x32xf32>
    %120 = arith.addf %116, %119 : vector<16x32xf32>
    %c2_70 = arith.constant 2 : index
    %c0_71 = arith.constant 0 : index
    %c0_72 = arith.constant 0 : index
    %121 = vector.load %arg10[%c2_70, %c0_71, %c0_72] : memref<3x32x32xf32, #tpu.memory_space<vmem>>, vector<1x32x32xf32>
    %122 = vector.shape_cast %121 : vector<1x32x32xf32> to vector<32x32xf32>
    %cst_73 = arith.constant dense<0.000000e+00> : vector<16x32xf32>
    %123 = tpu.matmul %113, %122, %cst_73 {dimension_numbers = #tpu.dot_dimension_numbers<[1], [0], [0], [1], [0, 0, 1, 1], [], []>} : vector<16x32xf32>, vector<32x32xf32>, vector<16x32xf32> -> vector<16x32xf32>
    %124 = arith.addf %120, %123 : vector<16x32xf32>
    %125 = arith.addf %98, %124 : vector<16x32xf32>
    %c0_74 = arith.constant 0 : index
    %c0_75 = arith.constant 0 : index
    %126 = vector.load %arg11[%c0_74, %c0_75] : memref<1x32xf32, #tpu.memory_space<vmem>>, vector<1x32xf32>
    %127 = vector.broadcast %126 : vector<1x32xf32> to vector<16x32xf32>
    %128 = arith.addf %125, %127 : vector<16x32xf32>
    %cst_76 = arith.constant 0.000000e+00 : f32
    %129 = vector.broadcast %cst_76 : f32 to vector<16x32xf32>
    %130 = arith.maximumf %128, %129 : vector<16x32xf32>
    %131 = tpu.iota {dimensions = array<i32: 0>} : vector<16x1xi32>
    %c0_i32_77 = arith.constant 0 : i32
    %132 = vector.broadcast %c0_i32_77 : i32 to vector<16x1xi32>
    %133 = arith.cmpi sgt, %131, %132 : vector<16x1xi32>
    %134 = arith.extui %133 : vector<16x1xi1> to vector<16x1xi32>
    %135 = arith.sitofp %134 : vector<16x1xi32> to vector<16x1xf32>
    %c15_i32_78 = arith.constant 15 : i32
    %136 = vector.broadcast %c15_i32_78 : i32 to vector<16x1xi32>
    %137 = arith.cmpi slt, %131, %136 : vector<16x1xi32>
    %138 = arith.extui %137 : vector<16x1xi1> to vector<16x1xi32>
    %139 = arith.sitofp %138 : vector<16x1xi32> to vector<16x1xf32>
    %c1_i32_79 = arith.constant 1 : i32
    %140 = tpu.dynamic_rotate %130 by %c1_i32_79 dim 0 : vector<16x32xf32>, i32 -> vector<16x32xf32>
    %141 = vector.broadcast %135 : vector<16x1xf32> to vector<16x32xf32>
    %142 = arith.mulf %140, %141 : vector<16x32xf32>
    %c15_i32_80 = arith.constant 15 : i32
    %143 = tpu.dynamic_rotate %130 by %c15_i32_80 dim 0 : vector<16x32xf32>, i32 -> vector<16x32xf32>
    %144 = vector.broadcast %139 : vector<16x1xf32> to vector<16x32xf32>
    %145 = arith.mulf %143, %144 : vector<16x32xf32>
    %c0_81 = arith.constant 0 : index
    %c0_82 = arith.constant 0 : index
    %c0_83 = arith.constant 0 : index
    %146 = vector.load %arg12[%c0_81, %c0_82, %c0_83] : memref<3x2x32xf32, #tpu.memory_space<vmem>>, vector<1x2x32xf32>
    %147 = vector.shape_cast %146 : vector<1x2x32xf32> to vector<2x32xf32>
    %cst_84 = arith.constant dense<0.000000e+00> : vector<2x16xf32>
    %148 = tpu.matmul %147, %142, %cst_84 {dimension_numbers = #tpu.dot_dimension_numbers<[1], [1], [0], [0], [0, 0, 1, 0], [], []>} : vector<2x32xf32>, vector<16x32xf32>, vector<2x16xf32> -> vector<2x16xf32>
    %c1_85 = arith.constant 1 : index
    %c0_86 = arith.constant 0 : index
    %c0_87 = arith.constant 0 : index
    %149 = vector.load %arg12[%c1_85, %c0_86, %c0_87] : memref<3x2x32xf32, #tpu.memory_space<vmem>>, vector<1x2x32xf32>
    %150 = vector.shape_cast %149 : vector<1x2x32xf32> to vector<2x32xf32>
    %cst_88 = arith.constant dense<0.000000e+00> : vector<2x16xf32>
    %151 = tpu.matmul %150, %130, %cst_88 {dimension_numbers = #tpu.dot_dimension_numbers<[1], [1], [0], [0], [0, 0, 1, 0], [], []>} : vector<2x32xf32>, vector<16x32xf32>, vector<2x16xf32> -> vector<2x16xf32>
    %152 = arith.addf %148, %151 : vector<2x16xf32>
    %c2_89 = arith.constant 2 : index
    %c0_90 = arith.constant 0 : index
    %c0_91 = arith.constant 0 : index
    %153 = vector.load %arg12[%c2_89, %c0_90, %c0_91] : memref<3x2x32xf32, #tpu.memory_space<vmem>>, vector<1x2x32xf32>
    %154 = vector.shape_cast %153 : vector<1x2x32xf32> to vector<2x32xf32>
    %cst_92 = arith.constant dense<0.000000e+00> : vector<2x16xf32>
    %155 = tpu.matmul %154, %145, %cst_92 {dimension_numbers = #tpu.dot_dimension_numbers<[1], [1], [0], [0], [0, 0, 1, 0], [], []>} : vector<2x32xf32>, vector<16x32xf32>, vector<2x16xf32> -> vector<2x16xf32>
    %156 = arith.addf %152, %155 : vector<2x16xf32>
    %c0_93 = arith.constant 0 : index
    %c0_94 = arith.constant 0 : index
    %157 = vector.load %arg13[%c0_93, %c0_94] : memref<2x1xf32, #tpu.memory_space<vmem>>, vector<2x1xf32>
    %158 = vector.broadcast %157 : vector<2x1xf32> to vector<2x16xf32>
    %159 = arith.addf %156, %158 : vector<2x16xf32>
    %160 = vector.extract_strided_slice %159 {offsets = [0, 0], sizes = [1, 16], strides = [1, 1]} : vector<2x16xf32> to vector<1x16xf32>
    %161 = vector.extract_strided_slice %159 {offsets = [1, 0], sizes = [1, 16], strides = [1, 1]} : vector<2x16xf32> to vector<1x16xf32>
    %162 = math.tanh %161 : vector<1x16xf32>
    %163 = arith.addf %160, %162 : vector<1x16xf32>
    %164 = tpu.concatenate %163, %160 in 0 : vector<1x16xf32>, vector<1x16xf32> -> vector<2x16xf32>
    %c0_95 = arith.constant 0 : index
    %c0_96 = arith.constant 0 : index
    %c0_97 = arith.constant 0 : index
    %165 = vector.load %arg14[%c0_95, %c0_96, %c0_97] : memref<1x2x16xf32, #tpu.memory_space<vmem>>, vector<1x2x16xf32>
    %166 = vector.shape_cast %165 : vector<1x2x16xf32> to vector<2x16xf32>
    %167 = vector.shape_cast %164 : vector<2x16xf32> to vector<1x2x16xf32>
    tpu.vector_store %arg14[%c0_95, %c0_96, %c0_97], %167 {strides = array<i32>} : memref<1x2x16xf32, #tpu.memory_space<vmem>>, vector<1x2x16xf32>,
    return
  }
  func.func @transform_0(%arg0: i32) -> (i32, i32, i32) {
    %c0_i32 = arith.constant 0 : i32
    %c0_i32_0 = arith.constant 0 : i32
    %c0_i32_1 = arith.constant 0 : i32
    return %arg0, %c0_i32, %c0_i32_0 : i32, i32, i32
  }
  func.func @transform_1(%arg0: i32) -> (i32, i32, i32) {
    %c0_i32 = arith.constant 0 : i32
    %c0_i32_0 = arith.constant 0 : i32
    %c0_i32_1 = arith.constant 0 : i32
    return %arg0, %c0_i32, %c0_i32_0 : i32, i32, i32
  }
  func.func @transform_2(%arg0: i32) -> (i32, i32, i32) {
    %c0_i32 = arith.constant 0 : i32
    %c0_i32_0 = arith.constant 0 : i32
    %c0_i32_1 = arith.constant 0 : i32
    %c0_i32_2 = arith.constant 0 : i32
    return %c0_i32, %c0_i32_0, %c0_i32_1 : i32, i32, i32
  }
  func.func @transform_3(%arg0: i32) -> (i32, i32) {
    %c0_i32 = arith.constant 0 : i32
    %c0_i32_0 = arith.constant 0 : i32
    %c0_i32_1 = arith.constant 0 : i32
    return %c0_i32, %c0_i32_0 : i32, i32
  }
  func.func @transform_4(%arg0: i32) -> (i32, i32) {
    %c0_i32 = arith.constant 0 : i32
    %c0_i32_0 = arith.constant 0 : i32
    %c0_i32_1 = arith.constant 0 : i32
    return %c0_i32, %c0_i32_0 : i32, i32
  }
  func.func @transform_5(%arg0: i32) -> (i32, i32) {
    %c0_i32 = arith.constant 0 : i32
    %c0_i32_0 = arith.constant 0 : i32
    %c0_i32_1 = arith.constant 0 : i32
    return %c0_i32, %c0_i32_0 : i32, i32
  }
  func.func @transform_6(%arg0: i32) -> (i32, i32, i32) {
    %c0_i32 = arith.constant 0 : i32
    %c0_i32_0 = arith.constant 0 : i32
    %c0_i32_1 = arith.constant 0 : i32
    %c0_i32_2 = arith.constant 0 : i32
    return %c0_i32, %c0_i32_0, %c0_i32_1 : i32, i32, i32
  }
  func.func @transform_7(%arg0: i32) -> (i32, i32) {
    %c0_i32 = arith.constant 0 : i32
    %c0_i32_0 = arith.constant 0 : i32
    %c0_i32_1 = arith.constant 0 : i32
    return %c0_i32, %c0_i32_0 : i32, i32
  }
  func.func @transform_8(%arg0: i32) -> (i32, i32, i32) {
    %c0_i32 = arith.constant 0 : i32
    %c0_i32_0 = arith.constant 0 : i32
    %c0_i32_1 = arith.constant 0 : i32
    %c0_i32_2 = arith.constant 0 : i32
    return %c0_i32, %c0_i32_0, %c0_i32_1 : i32, i32, i32
  }
  func.func @transform_9(%arg0: i32) -> (i32, i32, i32) {
    %c0_i32 = arith.constant 0 : i32
    %c0_i32_0 = arith.constant 0 : i32
    %c0_i32_1 = arith.constant 0 : i32
    %c0_i32_2 = arith.constant 0 : i32
    return %c0_i32, %c0_i32_0, %c0_i32_1 : i32, i32, i32
  }
  func.func @transform_10(%arg0: i32) -> (i32, i32) {
    %c0_i32 = arith.constant 0 : i32
    %c0_i32_0 = arith.constant 0 : i32
    %c0_i32_1 = arith.constant 0 : i32
    return %c0_i32, %c0_i32_0 : i32, i32
  }
  func.func @transform_11(%arg0: i32) -> (i32, i32, i32) {
    %c0_i32 = arith.constant 0 : i32
    %c0_i32_0 = arith.constant 0 : i32
    %c0_i32_1 = arith.constant 0 : i32
    %c0_i32_2 = arith.constant 0 : i32
    return %c0_i32, %c0_i32_0, %c0_i32_1 : i32, i32, i32
  }
  func.func @transform_12(%arg0: i32) -> (i32, i32) {
    %c0_i32 = arith.constant 0 : i32
    %c0_i32_0 = arith.constant 0 : i32
    %c0_i32_1 = arith.constant 0 : i32
    return %c0_i32, %c0_i32_0 : i32, i32
  }
  func.func @transform_13(%arg0: i32) -> (i32, i32, i32) {
    %c0_i32 = arith.constant 0 : i32
    %c0_i32_0 = arith.constant 0 : i32
    %c0_i32_1 = arith.constant 0 : i32
    return %arg0, %c0_i32, %c0_i32_0 : i32, i32, i32
  }
}

</mosaic_0001>

<bundles_post_ra>
// kernel: tpu_custom_call.1
= control target key start
LH: loop header
LB: loop body
LE: loop exit
PB: predicated region body
PF: predicated region fallthrough
CT: control target
= control target key end

     0   :  { %s3464_s0 = inlined_call_operand.vmem [shape: f32[2,24,4], index: 0, kind: input, shape index: {}]   ;;  %s3465_s1 = inlined_call_operand.vmem [shape: f32[2,16,4], index: 1, kind: input, shape index: {}]   ;;  %s3466_s2 = inlined_call_operand.vmem [shape: f32[3,4,32], index: 2, kind: input, shape index: {}]   ;;  %s3467_s3 = inlined_call_operand.hbm [shape: f32[1,32], index: 3, kind: input, shape index: {}]   ;;  %s3468_s4 = inlined_call_operand.vmem [shape: f32[16,24], index: 4, kind: input, shape index: {}]   ;;  %s3469_s5 = inlined_call_operand.hbm [shape: f32[1,32], index: 5, kind: input, shape index: {}]   ;;  %s3470_s6 = inlined_call_operand.hbm [shape: f32[3,4,32], index: 6, kind: input, shape index: {}]   ;;  %s3471_s7 = inlined_call_operand.hbm [shape: f32[1,32], index: 7, kind: input, shape index: {}]   ;;  %s3472_s8 = inlined_call_operand.vmem [shape: f32[3,32,32], index: 8, kind: input, shape index: {}]   ;;  %s3473_s9 = inlined_call_operand.hbm [shape: f32[3,32,32], index: 9, kind: input, shape index: {}]   ;;  %s3474_s10 = inlined_call_operand.vmem [shape: f32[1,32], index: 10, kind: input, shape index: {}]   ;;  %s3475_s11 = inlined_call_operand.vmem [shape: f32[3,2,32], index: 11, kind: input, shape index: {}]   ;;  %s3476_s12 = inlined_call_operand.vmem [shape: f32[2,1], index: 12, kind: input, shape index: {}]   ;;  %s3477_s13 = inlined_call_operand.hbm [shape: f32[2,2,16], index: 13, kind: output, shape index: {}]  }
   0x1   :  { %3488 = sst [smem:[#allocation22_spill]] %s3467_s3 }
   0x2   :  { %3489 = sst [smem:[#allocation23_spill]] %s3469_s5 }
   0x3   :  { %3490 = sst [smem:[#allocation24_spill]] %s3477_s13 }
   0x4   :  { %18 = vsyncpa [#allocation3], 0 }
   0x5   :  { %19 = vsyncpa [#allocation6], 0 }
   0x6   :  { %20 = vsyncpa [#allocation9], 0 }
   0x7   :  { %21 = vsyncpa [#allocation4], 0 }
   0x8   :  { %23 = vsyncpa [#allocation4 + $0x1], 0  ;;  %s3001_s25 = smov 0   ;;  %s3003_s26 = smov 0  }
   0x9   :  { %s3005_s27 = smov 0   ;;  %s3007_s28 = smov 0  }
   0xa LB: > { %3491 = sst [smem:[#allocation16_spill]] %s2903_s25  ;;  %s3022_s29 = sadd.s32 4294967295, %s2915_s28   ;;  %s2915_s28 = sphi %s3007_s28, %s3519_s28   ;;  %s2911_s27 = sphi %s3005_s27, %s3521_s27   ;;  %s2907_s26 = sphi %s3003_s26, %s3523_s26   ;;  %s2903_s25 = sphi %s3001_s25, %s3522_s25  }
   0xb   : > { %3492 = sst [smem:[#allocation17_spill]] %s2911_s27  ;;  %s2218_s30 = sadd.s32 4294967294, %s2915_s28  }
   0xc   : > { %3493 = sst [smem:[#allocation18_spill]] %s2915_s28  ;;  %s3026_s14 = sadd.s32 1, %s2915_s28  }
   0xd   : > { %3494 = sst [smem:[#allocation19_spill]] %s3026_s14  ;;  %s319_s15 = sadd.s32 1, %s2911_s27 }
   0xe   : > { %s316_s16 = ssub.s32 %s2915_s28, %s3026_s14  ;;  %p329_p0 = scmp.ne.s32.totalorder %s2911_s27, %s2907_s26 }
   0xf   : > { %p317_p1 = scmp.eq.s32.totalorder %s316_s16, 0  ;;  %p330_p2 = scmp.eq.s32.totalorder %s3022_s29, 1 }
  0x10   : > { %p335_p3 = scmp.ne.s32.totalorder %s2907_s26, %s2903_s25  ;;  %p336_p4 = scmp.eq.s32.totalorder %s2218_s30, 1 }
  0x11   : > { %s3037_s17 = scalar_select %p317_p1, %s2911_s27, %s319_s15  }
  0x12   : > { %p3039_p5 = por %p330_p2, %p329_p0  ;;  %p3043_p6 = por %p336_p4, %p335_p3 }
  0x13   : > { %3495 = sst [smem:[#allocation20_spill]] %s3037_s17  ;;  %p2219_p7 = scmp.ge.s32.totalorder %s2915_s28, 1 }
  0x14   : > { %s3496_s18 = scalar_select %p3039_p5, 1, 0 }
  0x15   : > { %s3497_s19 = scalar_select %p3043_p6, 1, 0 }
  0x16   : > { %p343_p8 = scmp.lt.s32.totalorder %s2915_s28, 3  ;;  %p3483_p9 = scmp.eq.s32.totalorder %s3022_s29, 0 }
  0x17   : > { %3498 = sst [smem:[#allocation21_spill]] %s3497_s19  ;;  %s2917_s21 = smov [#allocation5]  }
  0x18   : > { %p3050_p10 = pnand %p2219_p7, %p343_p8  ;;  %s373_s22 = sshll.u32 %s2917_s21, 4  ;;  %s374_s22 = int_to_ptr.vmem [resolvable:$true] %s373_s22 }
  0x19   : > { %s2918_s23 = smov [#allocation8]   ;;  %s2919_s15 = smov [#allocation2]  }
  0x1a   : > { %s3499_s20 = scalar_select %p3050_p10, 1, 0 }
  0x1b   : > { %p2622_p11 = pneg %p3050_p10  ;;  %s397_s24 = sshll.u32 %s2918_s23, 4  ;;  %s3062_s24 = int_to_ptr.vmem [resolvable:$true] %s397_s24 }
  0x1c   : > { %s359_s16 = sshll.u32 %s2919_s15, 4  ;;  %s3501_s5 = sld [smem:[#allocation23_spill]]  ;;  %s3064_s16 = int_to_ptr.vmem [resolvable:$true] %s359_s16 }
  0x1d   : > { %p3058_p12 = pnand %p3483_p9, %p2622_p11 }
  0x1f   : > { %p3074_p0 = pneg %p3058_p12 }
  0x22   : > { %s2701_s21 = scalar_lea.hbm %s3501_s5, 16 }
  0x23   : > { %p2702_p13 = scmp.ne.s32.totalorder %s3501_s5, %s2701_s21  ;;  %p2708_p3 = scmp.lt.u32.totalorder %s2701_s21, %s3501_s5 }
  0x25   : > { %p2704_p1 = pnand %p3074_p0, %p2702_p13 }
  0x27   : > { %p2705_p2 = pneg %p2704_p1 }
  0x29   : > { %p2710_p4 = pnand %p2708_p3, %p2705_p2 }
  0x2b   : > { %2713 = shalt.err (!%p2710_p4)
}
  0x2c   : > { %s2714_s27 = scalar_lea.vmem %s374_s22, 16  ;;  %s2721_s14 = scalar_lea.vmem %s374_s22, 32 }
  0x2d   : > { %p2715_p7 = scmp.ne.s32.totalorder %s374_s22, %s2714_s27  ;;  %p2722_p9 = scmp.lt.s32.totalorder %s374_s22, %s374_s22 }
  0x2e   : > { %p2723_p6 = scmp.lt.s32.totalorder %s2721_s14, %s2714_s27 }
  0x2f   : > { %p2717_p8 = pnand %p2715_p7, %p3074_p0 }
  0x30   : > { %p2724_p5 = por %p2723_p6, %p2722_p9 }
  0x31   : > { %p2718_p11 = pneg %p2717_p8 }
  0x33   : > { %p2725_p10 = pnand %p2724_p5, %p2718_p11 }
  0x35   : > { %2728 = shalt.err (!%p2725_p10)
}
  0x36   : > { %2628 = dma.hbm_to_vmem [thread:$0]  (!%p3058_p12), %s3501_s5, 16, %s374_s22, [#allocation6]  }
  0x37   : > { %s2729_s15 = scalar_lea.hbm %s3471_s7, 16 }
  0x38   : > { %p2730_p13 = scmp.ne.s32.totalorder %s3471_s7, %s2729_s15  ;;  %p2736_p5 = scmp.lt.u32.totalorder %s2729_s15, %s3471_s7 }
  0x3a   : > { %p2732_p1 = pnand %p2730_p13, %p3074_p0 }
  0x3c   : > { %p2733_p6 = pneg %p2732_p1 }
  0x3e   : > { %p2738_p9 = pnand %p2736_p5, %p2733_p6 }
  0x40   : > { %2741 = shalt.err (!%p2738_p9)
}
  0x41   : > { %s2742_s22 = scalar_lea.vmem %s3062_s24, 16  ;;  %s2749_s13 = scalar_lea.vmem %s3062_s24, 32 }
  0x42   : > { %p2743_p10 = scmp.ne.s32.totalorder %s3062_s24, %s2742_s22  ;;  %p2750_p4 = scmp.lt.s32.totalorder %s3062_s24, %s3062_s24 }
  0x43   : > { %p2751_p7 = scmp.lt.s32.totalorder %s2749_s13, %s2742_s22 }
  0x44   : > { %p2745_p2 = pnand %p2743_p10, %p3074_p0 }
  0x45   : > { %p2752_p8 = por %p2751_p7, %p2750_p4 }
  0x46   : > { %p2746_p3 = pneg %p2745_p2 }
  0x48   : > { %p2753_p11 = pnand %p2752_p8, %p2746_p3 }
  0x4a   : > { %2756 = shalt.err (!%p2753_p11)
}
  0x4b   : > { %2634 = dma.hbm_to_vmem [thread:$0]  (!%p3058_p12), %s3471_s7, 16, %s3062_s24, [#allocation9]  }
  0x4c   : > { %s3503_s3 = sld [smem:[#allocation22_spill]] }
  0x52   : > { %s2757_s21 = scalar_lea.hbm %s3503_s3, 16 }
  0x53   : > { %p2758_p13 = scmp.ne.s32.totalorder %s3503_s3, %s2757_s21  ;;  %p2764_p5 = scmp.lt.u32.totalorder %s2757_s21, %s3503_s3 }
  0x55   : > { %p2760_p1 = pnand %p2758_p13, %p3074_p0 }
  0x57   : > { %p2761_p6 = pneg %p2760_p1 }
  0x59   : > { %p2766_p9 = pnand %p2764_p5, %p2761_p6 }
  0x5b   : > { %2769 = shalt.err (!%p2766_p9)
}
  0x5c   : > { %s2770_s24 = scalar_lea.vmem %s3064_s16, 16  ;;  %s2777_s13 = scalar_lea.vmem %s3064_s16, 32 }
  0x5d   : > { %p2771_p10 = scmp.ne.s32.totalorder %s3064_s16, %s2770_s24  ;;  %p2778_p4 = scmp.lt.s32.totalorder %s3064_s16, %s3064_s16 }
  0x5e   : > { %p2779_p7 = scmp.lt.s32.totalorder %s2777_s13, %s2770_s24 }
  0x5f   : > { %p2773_p2 = pnand %p2771_p10, %p3074_p0 }
  0x60   : > { %p2780_p8 = por %p2779_p7, %p2778_p4 }
  0x61   : > { %p2774_p3 = pneg %p2773_p2 }
  0x63   : > { %p2781_p11 = pnand %p2780_p8, %p2774_p3 }
  0x65   : > { %2784 = shalt.err (!%p2781_p11)
}
  0x66   : > { %2625 = dma.hbm_to_vmem [thread:$0]  (!%p3058_p12), %s3503_s3, 16, %s3064_s16, [#allocation3]  }
  0x67   : > { %s2920_s19 = smov [#allocation7]   ;;  %s2785_s27 = scalar_lea.hbm %s3470_s6, 192 }
  0x68   : > { %s383_s25 = sshll.u32 %s2920_s19, 4  ;;  %p2786_p13 = scmp.ne.s32.totalorder %s3470_s6, %s2785_s27  ;;  %s384_s25 = int_to_ptr.vmem [resolvable:$true] %s383_s25 }
  0x69   : > { %p2792_p5 = scmp.lt.u32.totalorder %s2785_s27, %s3470_s6 }
  0x6a   : > { %p2788_p1 = pnand %p2786_p13, %p3074_p0 }
  0x6c   : > { %p2789_p6 = pneg %p2788_p1 }
  0x6e   : > { %p2794_p9 = pnand %p2792_p5, %p2789_p6 }
  0x70   : > { %2797 = shalt.err (!%p2794_p9)
}
  0x71   : > { %s2798_s16 = scalar_lea.vmem %s384_s25, 192  ;;  %p2806_p4 = scmp.lt.s32.totalorder %s384_s25, %s384_s25 }
  0x72   : > { %p2799_p10 = scmp.ne.s32.totalorder %s384_s25, %s2798_s16  ;;  %p2807_p7 = scmp.lt.s32.totalorder %s2798_s16, %s2798_s16 }
  0x74   : > { %p2801_p2 = pnand %p2799_p10, %p3074_p0  ;;  %p2808_p8 = por %p2807_p7, %p2806_p4 }
  0x76   : > { %p2802_p3 = pneg %p2801_p2 }
  0x78   : > { %p2809_p11 = pnand %p2808_p8, %p2802_p3 }
  0x7a   : > { %2812 = shalt.err (!%p2809_p11)
}
  0x7b   : > { %s2921_s28 = smov 64   ;;  %s2922_s17 = smov 4  }
  0x7c   : > { %2631 = dma.hbm_to_vmem [thread:$0]  (!%p3058_p12), %s3470_s6, 192, %s384_s25, [#allocation6], %s2921_s28, %s2921_s28, %s2922_s17  }
  0x7d   : > { %s2923_s15 = smov [#allocation10]   ;;  %s2813_s24 = scalar_lea.hbm %s3473_s9, 1536 }
  0x7e   : > { %s410_s27 = sshll.u32 %s2923_s15, 4  ;;  %p2814_p13 = scmp.ne.s32.totalorder %s3473_s9, %s2813_s24  ;;  %s411_s27 = int_to_ptr.vmem [resolvable:$true] %s410_s27 }
  0x7f   : > { %p2820_p5 = scmp.lt.u32.totalorder %s2813_s24, %s3473_s9 }
  0x80   : > { %p2816_p1 = pnand %p2814_p13, %p3074_p0 }
  0x82   : > { %p2817_p6 = pneg %p2816_p1 }
  0x84   : > { %p2822_p9 = pnand %p2820_p5, %p2817_p6 }
  0x86   : > { %2825 = shalt.err (!%p2822_p9)
}
  0x87   : > { %s2826_s25 = scalar_lea.vmem %s411_s27, 1536  ;;  %p2834_p4 = scmp.lt.s32.totalorder %s411_s27, %s411_s27 }
  0x88   : > { %p2827_p10 = scmp.ne.s32.totalorder %s411_s27, %s2826_s25  ;;  %p2835_p7 = scmp.lt.s32.totalorder %s2826_s25, %s2826_s25 }
  0x8a   : > { %p2829_p2 = pnand %p2827_p10, %p3074_p0  ;;  %p2836_p8 = por %p2835_p7, %p2834_p4 }
  0x8c   : > { %p2830_p3 = pneg %p2829_p2 }
  0x8e   : > { %p2837_p11 = pnand %p2836_p8, %p2830_p3 }
  0x90   : > { %2840 = shalt.err (!%p2837_p11)
}
  0x91   : > { %s2924_s28 = smov 128   ;;  %s2925_s17 = smov 8  }
  0x92   : > { %2637 = dma.hbm_to_vmem [thread:$0]  (!%p3058_p12), %s3473_s9, 1536, %s411_s27, [#allocation9], %s2924_s28, %s2924_s28, %s2925_s17  }
  0x93   : > { %p3504_p13 = scmp.ne.s32.totalorder %s3499_s20, 0 }
  0x94   : > { %p3505_p1 = scmp.eq.s32.totalorder (!%p3504_p13), %s3022_s29, 0 }
  0x95   : > { %451 = sbr.rel (%p3504_p13) target bundleno = 1158 (0x486), region = 72 }
  0x9c   : > { %2886 = dma.done.wait (%p3505_p1), [#allocation3], 16   ;;  %p3506_p0 = pmov %p3505_p1 }
  0x9e   : > { %2888 = vsyncadd (%p3506_p0), [#allocation3], 4294967280  ;;  %p3507_p6 = pmov %p3506_p0 }
  0x9f   : > { %p3508_p5 = pmov %p3506_p0 }
  0xa0   : > { %2890 = dma.done.wait (%p3507_p6), [#allocation6], 208  }
  0xa1   : > { %2892 = vsyncadd (%p3508_p5), [#allocation6], 4294967088  ;;  %p3509_p9 = pmov %p3506_p0 }
  0xa2   : > { %p3510_p12 = pmov %p3506_p0 }
  0xa3   : > { %2894 = dma.done.wait (%p3509_p9), [#allocation9], 1552  }
  0xa4   : > { %2896 = vsyncadd (%p3510_p12), [#allocation9], 4294965744  ;;  %p516_p10 = scmp.lt.s32.totalorder %s3022_s29, 1  ;;  %v531_v0 = vlaneseq  ;;  %v2926_v1 = vmov 0.0   ;;  %vm2927_vm0 = vmmov 0   ;;  %vm586_vm1 = vcmask 1043456  }
  0xa5   : > { %2583 = vmatprep.subr.mxu1 %v2926_v1  ;;  %2380 = vmatprep.mubr.msk.f32.mxu1 %vm2927_vm0, %v2926_v1  ;;  %vm576_vm2 = vcmask 31744   ;;  %v2238_v3 = vld [vmem:[%s3466_s2 + $0x4] sm:$0xf]  ;;  %v573_v12 = vld [vmem:[%s3466_s2] sm:$0xf]  ;;  %vm881_vm7 = vcmask 195584  }
  0xa6   : > { %s3193_s5 = scalar_select %p516_p10, %s3022_s29, 1  ;;  %2375 = vmatprep.subr.mxu0 %v2926_v1  ;;  %2377 = vmatprep.mubr.msk.f32.mxu0 %vm2927_vm0, %v2926_v1  ;;  %v3198_v2 = vshrl.u32 %v531_v0, 7  ;;  %v2247_v13 = vld [vmem:[%s3466_s2 + $0x8] sm:$0xf]  ;;  %v872_v26 = vld [vmem:[%s3468_s4] sm:$0xff]  ;;  %vm1274_vm9 = vcmask 261120  }
  0xa7   : > { %2584 = vmatpush3.msk.msra.mxu1 %vm586_vm1, %v2238_v3  ;;  %2376 = vmatpush3.msk.msra.mxu0 %vm586_vm1, %v2238_v3  ;;  %v2267_v27 = vld [vmem:[%s3472_s8 + $0x20] sm:$0xff]  ;;  %v2268_v28 = vld [vmem:[%s3472_s8 + $0x28] sm:$0xff]  ;;  %vm3381_vm10 = vmpackc.low %vm1274_vm9, %vm1274_vm9  ;;  %s513_s23 = sand.u32 1, %s2907_s26   ;;  %vm2079_vm11 = vcmask 1040384   ;;  %vm2081_vm12 = vcmask 123904   ;;  %s3513_s24 = sld [smem:[#allocation24_spill]] }
  0xa8   : > { %s2599_s20 = smul.u32 24, %s3193_s5  ;;  %vm535_vm3 = vcmp.gt.s32.totalorder %v3198_v2, 0  ;;  %v534_v6 = vadd.s32 16, %v3198_v2  ;;  %vm556_vm4 = vcmp.lt.s32.totalorder %v3198_v2, 1  ;;  %vm566_vm5 = vcmp.lt.s32.totalorder %v3198_v2, 7  ;;  %2386 = vmatprep.subr.mxu1 %v2926_v1  ;;  %2397 = vmatprep.subr.mxu0 %v2926_v1  ;;  %s2084_s16 = scalar_lea.sflag [#allocation4], %s513_s23 }
  0xa9   : > { %v3226_v15 = vsel %vm535_vm3, 1.0, %v2926_v1  ;;  %v2523_v29 = vpack.c.bf16 %v2268_v28, %v2267_v27  ;;  %v2252_v44 = vld [vmem:[#allocation2] ss:$0 sm:$0xff]  ;;  %p3514_p3 = scmp.ne.s32.totalorder %s3496_s18, 0  ;;  %s2930_s25 = smov [#allocation11]  }
  0xaa   : > { %s520_s21 = scalar_lea.vmem %s3464_s0, %s2599_s20  ;;  %vm546_vm6 = vcmp.lt.s32.totalorder %v534_v6, 23  ;;  %s2303_s20 = sshll.u32 %s3193_s5, 4 }
  0xab   : > { %v527_v4 = vld [vmem:[%s520_s21 + $0x8] sm:$0xff]  ;;  %v528_v5 = vld [vmem:[%s520_s21 + $0x10] sm:$0xff]  ;;  %v526_v9 = vld [vmem:[%s520_s21] sm:$0xff]  ;;  %v2237_v21 = vsel %vm546_vm6, 1.0, %v2926_v1  ;;  %s525_s21 = scalar_lea.vmem %s3465_s1, %s2303_s20  ;;  %s2300_s5 = sshll.u32 %s3022_s29, 5 }
  0xac   : > { %v564_v7 = vrot.slane %v527_v4, 1  ;;  %v555_v8 = vrot.slane %v528_v5, 7  ;;  %2381 = vmatmul.mubr.msk.f32.vlgmr.msra.gmra.mrb[0].mxu1 %vm576_vm2, %v527_v4  ;;  %v553_v10 = vrot.slane %v526_v9, 7  ;;  %v563_v11 = vrot.slane %v526_v9, 1  ;;  %2378 = vmatmul.mubr.msk.f32.vlgmr.msra.gmra.mrb[0].mxu0 %vm576_vm2, %v526_v9  ;;  %v529_v61 = vld [vmem:[%s525_s21] sm:$0xff]  ;;  %v530_v62 = vld [vmem:[%s525_s21 + $0x8] sm:$0xff] }
  0xad   : > { %2383 = vmatprep.mubr.msk.f32.mxu1 %vm2927_vm0, %v2926_v1  ;;  %v565_v14 = vrot.slane %v528_v5, 1  ;;  %2387 = vmatpush3.msk.msra.mxu1 %vm586_vm1, %v573_v12  ;;  %v554_v19 = vrot.slane %v527_v4, 7  ;;  %v971_v0 = vrot.slane %v529_v61, 7  ;;  %v972_v3 = vrot.slane %v530_v62, 7  ;;  %v873_v4 = vld [vmem:[%s3468_s4 + $0x8] sm:$0xff]  ;;  %s2232_s21 = sshll.u32 %s513_s23, 1  ;;  %s3422_s13 = scalar_lea.hbm %s3513_s24, %s2300_s5 }
  0xae   : > { %v559_v16 = vsel %vm556_vm4, %v555_v8, %v553_v10  ;;  %v568_v17 = vsel %vm566_vm5, %v563_v11, %v564_v7  ;;  %2398 = vmatpush3.msk.msra.mxu0 %vm586_vm1, %v2247_v13  ;;  %2399 = vmatprep.mubr.msk.f32.mxu0 %vm2927_vm0, %v2926_v1  ;;  %v1155_v9 = vld [vmem:[#allocation7 + $0x8] sm:$0xf]  ;;  %v978_v12 = vrot.slane %v530_v62, 1  ;;  %s515_s15 = scalar_lea.vmem [#allocation11], %s2232_s21  ;;  %s2845_s28 = sshll.u32 %s2930_s25, 4  ;;  %s2846_s28 = int_to_ptr.vmem [resolvable:$false] %s2845_s28 }
  0xaf   : > { %v560_v18 = vmul.f32 %v3226_v15, %v559_v16  ;;  %v567_v20 = vsel %vm566_vm5, %v564_v7, %v565_v14  ;;  %v569_v22 = vsel %vm566_vm5, %v565_v14, %v563_v11  ;;  %v558_v24 = vsel %vm556_vm4, %v553_v10, %v554_v19  ;;  %2524 = vmatprep.subr.bf16.mxu0 %v2523_v29  ;;  %v983_v7 = vld [vmem:[#allocation7] sm:$0xf]  ;;  %s2097_s27 = sshll.u32 %s515_s15, 4  ;;  %s2847_s17 = scalar_lea.vmem %s2846_s28, 64  ;;  %s3424_s27 = int_to_ptr.vmem [resolvable:$true] %s2097_s27 }
  0xb0   : > { %2384 = vmatmul.mubr.msk.f32.gmra.mrb[2].mxu1 %vm576_vm2, %v528_v5  ;;  %2400 = vmatmul.mubr.msk.f32.vlgmr.msra.gmra.mrb[2].mxu0 %vm576_vm2, %v568_v17  ;;  %v572_v23 = vmul.f32 %v2237_v21, %v569_v22  ;;  %v557_v25 = vsel %vm556_vm4, %v554_v19, %v555_v8  ;;  %v985_v5 = vld [vmem:[#allocation7 + $0x4] sm:$0xf]  ;;  %v974_v6 = vsel %vm556_vm4, %v972_v3, %v971_v0  ;;  %v533_v10 = vadd.s32 8, %v3198_v2  ;;  %v2269_v19 = vld [vmem:[%s3472_s8 + $0x30] sm:$0xff]  ;;  %v1265_v22 = vld [vmem:[%s3472_s8] sm:$0xff]  ;;  %s2841_s29 = scalar_lea.vmem %s3424_s27, 32  ;;  %p2848_p8 = scmp.lt.s32.totalorder %s3424_s27, %s2846_s28 }
  0xb1   : > { %2388 = vmatprep.mubr.msk.f32.mxu1 %vm2927_vm0, %v2926_v1  ;;  %2402 = vmatprep.mubr.msk.f32.mxu0 %vm2927_vm0, %v2926_v1  ;;  %v975_v8 = vmul.f32 %v3226_v15, %v974_v6  ;;  %v977_v11 = vrot.slane %v529_v61, 1  ;;  %v973_v13 = vsel %vm556_vm4, %v971_v0, %v972_v3  ;;  %v1821_v2 = vld [vmem:[%s3475_s11] sm:$0x3]  ;;  %p2842_p2 = scmp.ne.s32.totalorder %s3424_s27, %s2841_s29  ;;  %p2849_p11 = scmp.lt.s32.totalorder %s2847_s17, %s2841_s29 }
  0xb2   : > { %2526 = vmatpush3.bf16.msra.mxu0 %v2523_v29  ;;  %vm966_vm8 = vcmp.lt.s32.totalorder %v533_v10, 15  ;;  %v1540_v10 = vld [vmem:[#allocation10 + $0x18] sm:$0xff] }
  0xb3   : > { %v979_v14 = vsel %vm566_vm5, %v977_v11, %v978_v12  ;;  %v3301_v16 = vsel %vm966_vm8, 1.0, %v2926_v1  ;;  %v980_v17 = vsel %vm566_vm5, %v978_v12, %v977_v11  ;;  %p2843_p4 = pnand %p2842_p2, %p3514_p3  ;;  %p2850_p13 = por %p2849_p11, %p2848_p8 }
  0xb4   : > { %2389 = vmatmul.mubr.msk.f32.vlgmr.msra.gmra.mrb[4].mxu1 %vm576_vm2, %v560_v18  ;;  %2403 = vmatmul.mubr.msk.f32.gmra.mrb[4].mxu0 %vm576_vm2, %v567_v20  ;;  %v982_v18 = vmul.f32 %v3301_v16, %v980_v17  ;;  %v2270_v20 = vld [vmem:[%s3472_s8 + $0x38] sm:$0xff] }
  0xb5   : > { %2391 = vmatprep.mubr.msk.f32.mxu1 %vm2927_vm0, %v2926_v1  ;;  %2405 = vmatprep.mubr.msk.f32.mxu0 %vm2927_vm0, %v2926_v1  ;;  %v2527_v21 = vpack.c.bf16 %v2270_v20, %v2269_v19  ;;  %v1709_v19 = vld [vmem:[#allocation10 + $0x40] sm:$0xff]  ;;  %v1710_v20 = vld [vmem:[#allocation10 + $0x48] sm:$0xff]  ;;  %p2844_p7 = pneg %p2843_p4 }
  0xb7   : > { %2528 = vmatprep.subr.bf16.mxu0 %v2527_v21  ;;  %p2851_p1 = pnand %p2850_p13, %p2844_p7 }
  0xb8   : > { %2392 = vmatmul.mubr.msk.f32.gmra.mrb[6].mxu1 %vm576_vm2, %v558_v24  ;;  %2406 = vmatmul.mubr.msk.f32.gmra.mrb[6].mxu0 %vm576_vm2, %v572_v23  ;;  %v1266_v23 = vld [vmem:[%s3472_s8 + $0x8] sm:$0xff] }
  0xb9   : > { %2394 = vmatprep.mubr.msk.f32.mxu1 %vm2927_vm0, %v2926_v1  ;;  %2530 = vmatpush3.bf16.msra.mxu0 %v2527_v21  ;;  %v2531_v24 = vpack.c.bf16 %v1266_v23, %v1265_v22  ;;  %v2563_v21 = vpack.c.bf16 %v1710_v20, %v1709_v19  ;;  %v1711_v22 = vld [vmem:[#allocation10 + $0x50] sm:$0xff]  ;;  %v1712_v23 = vld [vmem:[#allocation10 + $0x58] sm:$0xff] }
  0xbb   : > { %2532 = vmatprep.subr.bf16.mxu0 %v2531_v24 }
  0xbc   : > { %2395 = vmatmul.mubr.msk.f32.gmra.mrb[8].mxu1 %vm576_vm2, %v557_v25  ;;  %v2253_v25 = vld [vmem:[#allocation5] ss:$0 sm:$0xff] }
  0xbd   : > { %2414 = vmatprep.mubr.msk.f32.mxu1 %vm881_vm7, %v872_v26 }
 0x17f   : > { %v661_v30 = vpop.f32.mrb[0].mxu1  ;;  %v656_v31 = vpop.f32.mrb[0].mxu0 }
 0x180   : > { %v2382_v32 = vpop.f32.mrb[1].mxu1  ;;  %v2379_v33 = vpop.f32.mrb[1].mxu0 }
 0x183   : > { %v666_v34 = vpop.f32.mrb[2].mxu1  ;;  %v842_v35 = vpop.f32.mrb[2].mxu0 }
 0x184   : > { %v2385_v36 = vpop.f32.mrb[3].mxu1  ;;  %v2401_v37 = vpop.f32.mrb[3].mxu0 }
 0x187   : > { %v748_v38 = vpop.f32.mrb[4].mxu1  ;;  %v847_v39 = vpop.f32.mrb[4].mxu0 }
 0x188   : > { %v749_v40 = vadd.f32 %v748_v38, %v656_v31  ;;  %v2390_v41 = vpop.f32.mrb[5].mxu1  ;;  %v2404_v42 = vpop.f32.mrb[5].mxu0  ;;  %v1268_v31 = vld [vmem:[%s3472_s8 + $0x18] sm:$0xff] }
 0x18a   : > { %v856_v43 = vadd.f32 %v842_v35, %v749_v40  ;;  %v2276_v40 = vld [vmem:[%s3472_s8 + $0x48] sm:$0xff] }
 0x18b   : > { %v753_v45 = vpop.f32.mrb[6].mxu1  ;;  %v852_v46 = vpop.f32.mrb[6].mxu0 }
 0x18c   : > { %v754_v47 = vadd.f32 %v753_v45, %v661_v30  ;;  %v2393_v48 = vpop.f32.mrb[7].mxu1  ;;  %v2407_v49 = vpop.f32.mrb[7].mxu0  ;;  %v866_v50 = vadd.f32 %v2252_v44, %v856_v43  ;;  %v1267_v30 = vld [vmem:[%s3472_s8 + $0x10] sm:$0xff] }
 0x18d   : > { %v2535_v36 = vpack.c.bf16 %v1268_v31, %v1267_v30  ;;  %v2278_v48 = vld [vmem:[%s3472_s8 + $0x58] sm:$0xff] }
 0x18e   : > { %v857_v51 = vadd.f32 %v847_v39, %v754_v47  ;;  %v869_v56 = vmax.f32 %v866_v50, 0.0  ;;  %v2275_v39 = vld [vmem:[%s3472_s8 + $0x40] sm:$0xff]  ;;  %v2277_v47 = vld [vmem:[%s3472_s8 + $0x50] sm:$0xff] }
 0x18f   : > { %v758_v52 = vpop.f32.mrb[8].mxu1  ;;  %v2543_v49 = vpack.c.bf16 %v2278_v48, %v2277_v47  ;;  %v1542_v50 = vld [vmem:[#allocation10 + $0x20] sm:$0xff] }
 0x190   : > { %v867_v53 = vadd.f32 %v2252_v44, %v857_v51  ;;  %v759_v54 = vadd.f32 %v758_v52, %v666_v34  ;;  %v2396_v55 = vpop.f32.mrb[9].mxu1  ;;  %v1543_v51 = vld [vmem:[#allocation10 + $0x28] sm:$0xff] }
 0x191   : > { %v2547_v52 = vpack.c.bf16 %v1543_v51, %v1542_v50  ;;  %v1545_v55 = vld [vmem:[#allocation10 + $0x38] sm:$0xff]  ;;  %v2288_v50 = vld [vmem:[%s3475_s11 + $0x2] sm:$0x3] }
 0x192   : > { %v870_v57 = vmax.f32 %v867_v53, 0.0  ;;  %v858_v58 = vadd.f32 %v852_v46, %v759_v54  ;;  %v2539_v46 = vpack.c.bf16 %v2276_v40, %v2275_v39  ;;  %v2266_v53 = vld [vmem:[#allocation8] ss:$0 sm:$0xff]  ;;  %v1544_v54 = vld [vmem:[#allocation10 + $0x30] sm:$0xff] }
 0x194   : > { %v868_v59 = vadd.f32 %v2252_v44, %v858_v58  ;;  %v2519_v60 = vpack.c.bf16 %v870_v57, %v869_v56 }
 0x196   : > { %v871_v63 = vmax.f32 %v868_v59, 0.0  ;;  %2520 = vmatprep.subr.bf16.mxu1 %v2519_v60 }
 0x197   : > { %2522 = vmatpush3.bf16.msra.mxu1 %v2519_v60  ;;  %v2551_v60 = vpack.c.bf16 %v1545_v55, %v1544_v54 }
 0x198   : > { %2412 = vmatprep.subr.mxu1 %v871_v63 }
 0x19b   : > { %2413 = vmatpush3.msra.mxu1 %v871_v63  ;;  %v1538_v63 = vld [vmem:[#allocation10 + $0x8] sm:$0xff] }
 0x19c   : > { %2415 = vmatmul.mubr.msk.f32.vlgmr.msra.gmra.mrb[10].mxu1 %vm881_vm7, %v873_v4  ;;  %2417 = vmatprep.subr.msk.mxu1 %vm586_vm1, %v985_v5 }
 0x19d   : > { %2418 = vmatpush3.msk.msra.mxu1 %vm586_vm1, %v985_v5  ;;  %2419 = vmatprep.mubr.msk.f32.mxu1 %vm576_vm2, %v529_v61 }
 0x19e   : > { %2422 = vmatprep.subr.msk.mxu1 %vm586_vm1, %v983_v7 }
 0x1a0   : > { %2420 = vmatmul.mubr.msk.f32.vlgmr.msra.gmra.mrb[12].mxu1 %vm576_vm2, %v530_v62  ;;  %v1537_v62 = vld [vmem:[#allocation10] sm:$0xff] }
 0x1a1   : > { %2423 = vmatpush3.msk.msra.mxu1 %vm586_vm1, %v983_v7  ;;  %2424 = vmatprep.mubr.msk.f32.mxu1 %vm576_vm2, %v975_v8  ;;  %v2555_v6 = vpack.c.bf16 %v1538_v63, %v1537_v62 }
 0x1a2   : > { %2427 = vmatprep.subr.msk.mxu1 %vm586_vm1, %v1155_v9 }
 0x1a8   : > { %2425 = vmatmul.mubr.msk.f32.vlgmr.msra.gmra.mrb[12].mxu1 %vm576_vm2, %v973_v13 }
 0x1a9   : > { %2428 = vmatpush3.msk.msra.mxu1 %vm586_vm1, %v1155_v9  ;;  %2429 = vmatprep.mubr.msk.f32.mxu1 %vm576_vm2, %v979_v14  ;;  %v1539_v9 = vld [vmem:[#allocation10 + $0x10] sm:$0xff] }
 0x1b0   : > { %2430 = vmatmul.mubr.msk.f32.vlgmr.msra.gmra.mrb[12].mxu1 %vm576_vm2, %v982_v18  ;;  %v2559_v18 = vpack.c.bf16 %v1540_v10, %v1539_v9 }
 0x1b1   : > { %2502 = vmatprep.mubr.msk.f32.mxu1 %vm2927_vm0, %v2926_v1 }
 0x26f   : > { %v2416_v26 = vpop.f32.mrb[10].mxu1 }
 0x270   : > { %v960_v27 = vadd.f32 %v2416_v26, %v2253_v25  ;;  %v954_v28 = vpop.f32.mrb[11].mxu1  ;;  %v2928_v26 = vmov 0.0|0.0  }
 0x271   : > { %v955_v29 = vadd.f32 %v2253_v25, %v954_v28  ;;  %2571 = vmatprep.subr.bf16.mxu1 %v2928_v26  ;;  %v2929_v28 = vmov 0  }
 0x272   : > { %v964_v32 = vmax.f32 %v960_v27, 0.0  ;;  %v2064_v27 = vld [vmem:[%s3476_s12] sm:$0x3]  ;;  %2698 = vset.pattern.permute.xlu0 %v2929_v28 }
 0x273   : > { %v963_v33 = vmax.f32 %v955_v29, 0.0  ;;  %2067 = vperm.xlu0 %2698, %v2064_v27   ;;  %v2287_v29 = vld [vmem:[%s3474_s10] ss:$0 sm:$0xff] }
 0x274   : > { %v1254_v34 = vrot.slane %v964_v32, 7  ;;  %v1260_v35 = vrot.slane %v964_v32, 1 }
 0x275   : > { %v1253_v37 = vrot.slane %v963_v33, 7  ;;  %v1259_v38 = vrot.slane %v963_v33, 1  ;;  %2440 = vmatprep.mubr.msk.f32.mxu0 %vm1274_vm9, %v963_v33 }
 0x276   : > { %2441 = vmatmul.mubr.msk.f32.vlgmr.msra.gmra.mrb[8].mxu0 %vm1274_vm9, %v964_v32 }
 0x277   : > { %v1262_v41 = vsel %vm566_vm5, %v1260_v35, %v1259_v38  ;;  %2534 = vmatpush3.bf16.msra.mxu0 %v2531_v24  ;;  %v1256_v42 = vsel %vm556_vm4, %v1254_v34, %v1253_v37  ;;  %v1255_v43 = vsel %vm556_vm4, %v1253_v37, %v1254_v34  ;;  %v1261_v44 = vsel %vm566_vm5, %v1259_v38, %v1260_v35 }
 0x278   : > { %2536 = vmatprep.subr.bf16.mxu0 %v2535_v36  ;;  %v1257_v45 = vmul.f32 %v3226_v15, %v1256_v42  ;;  %v1264_v57 = vmul.f32 %v3301_v16, %v1262_v41  ;;  %v2567_v24 = vpack.c.bf16 %v1712_v23, %v1711_v22 }
 0x27a   : > { %2451 = vmatprep.mubr.msk.f32.mxu0 %vm1274_vm9, %v1257_v45 }
 0x27b   : > { %2538 = vmatpush3.bf16.msra.mxu0 %v2535_v36 }
 0x27c   : > { %2540 = vmatprep.subr.bf16.mxu0 %v2539_v46 }
 0x27e   : > { %2452 = vmatmul.mubr.msk.f32.vlgmr.msra.gmra.mrb[8].mxu0 %vm1274_vm9, %v1255_v43 }
 0x27f   : > { %2542 = vmatpush3.bf16.msra.mxu0 %v2539_v46  ;;  %2462 = vmatprep.mubr.msk.f32.mxu0 %vm1274_vm9, %v1261_v44 }
 0x280   : > { %2544 = vmatprep.subr.bf16.mxu0 %v2543_v49 }
 0x283   : > { %v2431_v56 = vpop.f32.mrb[12].mxu1  ;;  %2546 = vmatpush3.bf16.msra.mxu0 %v2543_v49 }
 0x284   : > { %v1250_v58 = vadd.f32 %v2431_v56, %v2266_v53  ;;  %v1231_v59 = vpop.f32.mrb[13].mxu1  ;;  %2548 = vmatprep.subr.bf16.mxu0 %v2547_v52 }
 0x285   : > { %v1249_v61 = vadd.f32 %v2266_v53, %v1231_v59 }
 0x286   : > { %v1252_v0 = vmax.f32 %v1250_v58, 0.0  ;;  %2463 = vmatmul.mubr.msk.f32.vlgmr.msra.gmra.mrb[8].mxu0 %vm1274_vm9, %v1264_v57 }
 0x287   : > { %v1251_v3 = vmax.f32 %v1249_v61, 0.0  ;;  %2550 = vmatpush3.bf16.msra.mxu0 %v2547_v52 }
 0x288   : > { %v1526_v4 = vrot.slane %v1252_v0, 7  ;;  %v1532_v5 = vrot.slane %v1252_v0, 1  ;;  %2552 = vmatprep.subr.bf16.mxu0 %v2551_v60 }
 0x289   : > { %v1525_v7 = vrot.slane %v1251_v3, 7  ;;  %v1531_v8 = vrot.slane %v1251_v3, 1  ;;  %2473 = vmatprep.mubr.msk.f32.mxu0 %vm1274_vm9, %v1251_v3 }
 0x28b   : > { %v1534_v11 = vsel %vm566_vm5, %v1532_v5, %v1531_v8  ;;  %2554 = vmatpush3.bf16.msra.mxu0 %v2551_v60  ;;  %v1528_v12 = vsel %vm556_vm4, %v1526_v4, %v1525_v7  ;;  %v1527_v13 = vsel %vm556_vm4, %v1525_v7, %v1526_v4  ;;  %v1533_v14 = vsel %vm566_vm5, %v1531_v8, %v1532_v5 }
 0x28c   : > { %2556 = vmatprep.subr.bf16.mxu0 %v2555_v6  ;;  %v1529_v17 = vmul.f32 %v3226_v15, %v1528_v12  ;;  %v1536_v25 = vmul.f32 %v3301_v16, %v1534_v11 }
 0x28e   : > { %2474 = vmatmul.mubr.msk.f32.vlgmr.msra.gmra.mrb[8].mxu0 %vm1274_vm9, %v1252_v0 }
 0x28f   : > { %2558 = vmatpush3.bf16.msra.mxu0 %v2555_v6  ;;  %2484 = vmatprep.mubr.msk.f32.mxu0 %vm1274_vm9, %v1529_v17 }
 0x290   : > { %2560 = vmatprep.subr.bf16.mxu0 %v2559_v18 }
 0x293   : > { %2562 = vmatpush3.bf16.msra.mxu0 %v2559_v18 }
 0x294   : > { %2564 = vmatprep.subr.bf16.mxu0 %v2563_v21 }
 0x296   : > { %2485 = vmatmul.mubr.msk.f32.vlgmr.msra.gmra.mrb[8].mxu0 %vm1274_vm9, %v1527_v13 }
 0x297   : > { %2566 = vmatpush3.bf16.msra.mxu0 %v2563_v21  ;;  %2495 = vmatprep.mubr.msk.f32.mxu0 %vm1274_vm9, %v1533_v14 }
 0x298   : > { %2568 = vmatprep.subr.bf16.mxu0 %v2567_v24 }
 0x29b   : > { %2570 = vmatpush3.bf16.msra.mxu0 %v2567_v24 }
 0x29e   : > { %2496 = vmatmul.mubr.msk.f32.vlgmr.msra.gmra.mrb[8].mxu0 %vm1274_vm9, %v1536_v25 }
 0x2f2   : > { %v2068_v56 = vpop.permute.xlu0 %2067 }
 0x371   : > { %v2497_v30 = vpop.f32.mrb[8].mxu0 }
 0x372   : > { %v1806_v31 = vadd.f32 %v2497_v30, %v2287_v29  ;;  %v1785_v32 = vpop.f32.mrb[9].mxu0 }
 0x373   : > { %v1805_v33 = vadd.f32 %v2287_v29, %v1785_v32 }
 0x374   : > { %v1808_v34 = vmax.f32 %v1806_v31, 0.0 }
 0x375   : > { %v1807_v35 = vmax.f32 %v1805_v33, 0.0 }
 0x376   : > { %v1810_v36 = vrot.slane %v1808_v34, 7  ;;  %v1816_v37 = vrot.slane %v1808_v34, 1 }
 0x377   : > { %v1809_v39 = vrot.slane %v1807_v35, 7  ;;  %v1815_v40 = vrot.slane %v1807_v35, 1  ;;  %v2572_v41 = vpack.c.bf16 %v1808_v34, %v1807_v35 }
 0x379   : > { %v1811_v42 = vsel %vm556_vm4, %v1809_v39, %v1810_v36  ;;  %v1812_v43 = vsel %vm556_vm4, %v1810_v36, %v1809_v39  ;;  %v1817_v44 = vsel %vm566_vm5, %v1815_v40, %v1816_v37  ;;  %v1818_v45 = vsel %vm566_vm5, %v1816_v37, %v1815_v40  ;;  %2574 = vmatpush3.bf16.xpose.msk.msra.mxu1 %vm3381_vm10, %v2572_v41 }
 0x37a   : > { %v1813_v46 = vmul.f32 %v3226_v15, %v1812_v43  ;;  %v1820_v47 = vmul.f32 %v3301_v16, %v1818_v45  ;;  %2575 = vmatprep.subr.bf16.mxu1 %v2928_v26  ;;  %v2295_v15 = vld [vmem:[%s3475_s11 + $0x4] sm:$0x3] }
 0x37c   : > { %v2576_v48 = vpack.c.bf16 %v1811_v42, %v1813_v46  ;;  %v2580_v49 = vpack.c.bf16 %v1820_v47, %v1817_v44 }
 0x380   : > { %2503 = vmatmul.mubr.msk.f32.vlgmr.msra.gmra.mrb[14].mxu1 %vm1274_vm9, %v2288_v50 }
 0x381   : > { %2578 = vmatpush3.bf16.xpose.msk.msra.mxu1 %vm3381_vm10, %v2576_v48  ;;  %2509 = vmatprep.mubr.msk.f32.mxu1 %vm2927_vm0, %v2926_v1 }
 0x382   : > { %2579 = vmatprep.subr.bf16.mxu1 %v2928_v26 }
 0x388   : > { %2510 = vmatmul.mubr.msk.f32.vlgmr.msra.gmra.mrb[16].mxu1 %vm1274_vm9, %v1821_v2 }
 0x389   : > { %2582 = vmatpush3.bf16.xpose.msk.msra.mxu1 %vm3381_vm10, %v2580_v49  ;;  %2516 = vmatprep.mubr.msk.f32.mxu1 %vm2927_vm0, %v2926_v1 }
 0x390   : > { %2517 = vmatmul.mubr.msk.f32.vlgmr.msra.gmra.mrb[18].mxu1 %vm1274_vm9, %v2295_v15 }
 0x453   : > { %v1899_v16 = vpop.f32.mrb[14].mxu1 }
 0x454   : > { %v2504_v51 = vpop.f32.mrb[15].mxu1 }
 0x45b   : > { %v1978_v52 = vpop.f32.mrb[16].mxu1 }
 0x45c   : > { %v1979_v53 = vadd.f32 %v1978_v52, %v1899_v16  ;;  %v2511_v54 = vpop.f32.mrb[17].mxu1 }
 0x463   : > { %v2059_v55 = vpop.f32.mrb[18].mxu1 }
 0x464   : > { %v2063_v57 = vadd.f32 %v2059_v55, %v1979_v53  ;;  %v2518_v58 = vpop.f32.mrb[19].mxu1 }
 0x466   : > { %v2070_v59 = vadd.f32 %v2068_v56, %v2063_v57 }
 0x468   : > { %2699 = vtanh.f32 %v2070_v59  ;;  %v2077_v62 = vrot.slane %v2070_v59, 7 }
 0x472   : > { %v2700_v1 = vpop.eup %2699 }
 0x473   : > { %v2073_v60 = vrot.slane %v2700_v1, 1 }
 0x475   : > { %v2075_v61 = vadd.f32 %v2073_v60, %v2070_v59 }
 0x477   : > { %v2080_v63 = vsel %vm2079_vm11, %v2075_v61, %v2077_v62 }
 0x478   : > { %2082 = vst.msk [vmem:[%s515_s15] sm:$0x3] %vm2081_vm12, %v2080_v63 }
 0x479   : > { %2854 = shalt.err (!%p2851_p1)
}
 0x47a   : > { %s2855_s19 = scalar_lea.hbm %s3422_s13, 32  ;;  %s2859_s30 = scalar_lea.hbm %s3513_s24, 64 }
 0x47b   : > { %p2856_p0 = scmp.ne.s32.totalorder %s3422_s13, %s2855_s19  ;;  %p2860_p9 = scmp.lt.u32.totalorder %s3422_s13, %s3513_s24 }
 0x47c   : > { %p2861_p12 = scmp.lt.u32.totalorder %s2859_s30, %s2855_s19  ;;  %p2863_p2 = scmp.lt.u32.totalorder %s2855_s19, %s3422_s13 }
 0x47d   : > { %p2857_p6 = pnand %p2856_p0, %p3514_p3 }
 0x47e   : > { %p2862_p10 = por %p2861_p12, %p2860_p9 }
 0x47f   : > { %p2858_p5 = pneg %p2857_p6 }
 0x480   : > { %p2864_p4 = por %p2863_p2, %p2862_p10 }
 0x482   : > { %p2865_p7 = pnand %p2864_p4, %p2858_p5 }
 0x484   : > { %2868 = shalt.err (!%p2865_p7)
}
 0x485   : > { %2620 = dma.vmem_to_hbm [thread:$0]  (%p3514_p3), %s3424_s27, 32, %s3422_s13, %s2084_s16  }
 0x486 PF: > { %s3515_s5 = sld [smem:[#allocation18_spill]]  ;;  %s3516_s15 = sld [smem:[#allocation16_spill]] }
 0x487   : > { %s3517_s14 = sld [smem:[#allocation21_spill]] }
 0x48c   : > { %p2652_p8 = scmp.ge.s32.totalorder %s3515_s5, 2  ;;  %s2109_s22 = sand.u32 1, %s3516_s15  }
 0x48d   : > { %p3518_p11 = scmp.ne.s32.totalorder %s3517_s14, 0  ;;  %s2110_s29 = scalar_lea.sflag [#allocation4], %s2109_s22 }
 0x48f   : > { %p2639_p13 = pnand %p2652_p8, %p3518_p11 }
 0x491   : > { %2898 = dma.done.wait (!%p2639_p13), %s2110_s29, 32  }
 0x492   : > { %2900 = vsyncadd (!%p2639_p13), %s2110_s29, 4294967264  ;;  %s3519_s28 = sld [smem:[#allocation19_spill]]  ;;  %s3520_s17 = sld [smem:[#allocation17_spill]] }
 0x493   : > { %s3521_s27 = sld [smem:[#allocation20_spill]]  ;;  %s3522_s25 = smov %s2907_s26 }
 0x498   : > { %p26_p1 = scmp.ge.s32.totalorder %s3519_s28, 4   ;;  %s3523_s26 = smov %s3520_s17 }
 0x49a   :  { %28 = sbr.rel (!%p26_p1) target bundleno = 10 (0xa), region = 141 }
 0x4a1   :  { %2115 = vsyncpa [#allocation3], 1 }
 0x4a2   :  { %2117 = vsyncpa [#allocation3 + $0x1], 1 }
 0x4a3   :  { %2118 = vsyncpa [#allocation6], 1 }
 0x4a4   :  { %2119 = vsyncpa [#allocation9], 1 }
 0x4a5   :  { %2120 = vsyncpa [#allocation4], 1 }
 0x4a6   :  { %2122 = vsyncpa [#allocation4 + $0x1], 1 }

</bundles_post_ra>
